<compile_context>
chip_gen: v5e
topology: v5e:2x2
jax: 0.10.0
libtpu: 0.0.40
codegen_flags: <defaults>
</compile_context>

<pallas_src>
import numpy as np
import jax
import jax.numpy as jnp
from jax.experimental import pallas as pl
from jax.experimental.pallas import tpu as pltpu

EPS = 1e-5          # torch BatchNorm1d default eps
SUBLANE = 8         # f32 sublane tile


# ---------------------------------------------------------------------------
# Pallas kernel: whole batch in one step, everything in (C, B*N) orientation
# ---------------------------------------------------------------------------
def gsnet_kernel(x_ref, w1_ref, b1_ref, w3_ref, b3_ref, out_ref):
    # x_ref:   (K, BN)          batch-flattened NCL input (BN = B*N on the lane axis)
    # w1_ref:  (64, K)          conv1 weight with bn1 folded in
    # b1_ref:  (64, 1)          folded conv1+bn1 bias
    # w3_ref:  (OUT_PAD, 64)    conv3 weight, zero-padded to 8 output rows
    # b3_ref:  (OUT_PAD, 1)     conv3 bias, zero-padded
    # out_ref: (OUT_PAD, BN)
    x = x_ref[...]                                    # (K, BN)
    k_in = x.shape[0]
    w1 = w1_ref[...]                                  # (64, K)

    # conv1 (K -> 64) as f32 VPU broadcast-FMAs: K is tiny (2), an MXU pass is wasted.
    h = b1_ref[...] + w1[:, 0:1] * x[0:1, :]          # (64, BN)
    for c in range(1, k_in):                          # static unroll (k_in == 2)
        h = h + w1[:, c:c + 1] * x[c:c + 1, :]
    h = jnp.maximum(h, 0.0)                           # relu(bn1(conv1(x)))

    # conv3 (64 -> OUT_PAD): one batched MXU matmul over all B*N lanes, bf16 operands,
    # f32 accumulation. Output is a full 8-sublane slab -> unmasked lane-dense store.
    g = jnp.dot(w3_ref[...].astype(jnp.bfloat16),
                h.astype(jnp.bfloat16),
                preferred_element_type=jnp.float32)   # (OUT_PAD, BN)
    out_ref[...] = g + b3_ref[...]


# ---------------------------------------------------------------------------
# Parameter setup / BN folding (plain-JAX glue)
# ---------------------------------------------------------------------------
def init_params(key, *, k=2, out_k=3):
    ki = iter(jax.random.split(key, 16))

    def w(shape, scale=0.1):
        return scale * jax.random.normal(next(ki), shape, dtype=jnp.float32)

    p = {
        # conv1: PyTorch weight (64, k, 1) -> stored as (64, k); bias (64,)
        'w1': w((64, k)), 'b1': w((64,)),
        # bn1 running stats (eval mode)
        'bn1_gamma': 1.0 + 0.1 * jax.random.normal(next(ki), (64,), dtype=jnp.float32),
        'bn1_beta':  0.1 * jax.random.normal(next(ki), (64,), dtype=jnp.float32),
        'bn1_mean':  0.1 * jax.random.normal(next(ki), (64,), dtype=jnp.float32),
        'bn1_var':   1.0 + 0.5 * jnp.abs(jax.random.normal(next(ki), (64,), dtype=jnp.float32)),
        # conv3: (out_k, 64, 1) -> (out_k, 64); bias (out_k,)
        'w3': w((out_k, 64)), 'b3': w((out_k,)),
        # NOTE: conv2/bn2 exist in the module but are unused in forward -> omitted.
    }
    return p


def fold_params(p):
    """Fold eval-mode bn1 + conv1 bias; zero-pad conv3 rows to a full 8-sublane slab."""
    scale = p['bn1_gamma'] / jnp.sqrt(p['bn1_var'] + EPS)                # (64,)
    w1f = p['w1'] * scale[:, None]                                       # (64, K)
    b1f = ((p['b1'] - p['bn1_mean']) * scale + p['bn1_beta'])[:, None]   # (64, 1)

    out_k = p['w3'].shape[0]
    out_pad = ((out_k + SUBLANE - 1) // SUBLANE) * SUBLANE               # 3 -> 8
    pad = out_pad - out_k
    w3p = jnp.pad(p['w3'], ((0, pad), (0, 0)))                           # (OUT_PAD, 64)
    b3p = jnp.pad(p['b3'], ((0, pad),))[:, None]                         # (OUT_PAD, 1)
    return w1f, b1f, w3p, b3p, out_k, out_pad


# ---------------------------------------------------------------------------
# Wrapper (matches GSNet.forward(x) with x in NCL layout)
# ---------------------------------------------------------------------------
def gsnet_forward(x, params):
    B, K, N = x.shape
    BN = B * N
    w1f, b1f, w3p, b3p, out_k, out_pad = fold_params(params)

    # Batch-flatten so the lane axis is B*N wide and the whole problem is one step.
    x2d = jnp.transpose(x, (1, 0, 2)).reshape(K, BN)                     # (K, BN)

    out = pl.pallas_call(
        gsnet_kernel,
        out_shape=jax.ShapeDtypeStruct((out_pad, BN), jnp.float32),
        grid=(1,),
        in_specs=[
            pl.BlockSpec((K, BN), lambda i: (0, 0)),
            pl.BlockSpec((64, K), lambda i: (0, 0)),
            pl.BlockSpec((64, 1), lambda i: (0, 0)),
            pl.BlockSpec((out_pad, 64), lambda i: (0, 0)),
            pl.BlockSpec((out_pad, 1), lambda i: (0, 0)),
        ],
        out_specs=pl.BlockSpec((out_pad, BN), lambda i: (0, 0)),
    )(x2d, w1f, b1f, w3p, b3p)

    # Drop the sublane padding and restore NCL layout (tiny layout-plumbing slice).
    return out[:out_k].reshape(out_k, B, N).transpose(1, 0, 2)           # (B, out_k, N)


# ---------------------------------------------------------------------------
# Pure-JAX reference (eval-mode semantics) for verification
# ---------------------------------------------------------------------------
def reference_forward(x, p):
    h = jnp.einsum('ok,bkn->bon', p['w1'], x) + p['b1'][None, :, None]
    h = (h - p['bn1_mean'][None, :, None]) / jnp.sqrt(p['bn1_var'][None, :, None] + EPS)
    h = h * p['bn1_gamma'][None, :, None] + p['bn1_beta'][None, :, None]
    h = jax.nn.relu(h)
    return jnp.einsum('ok,bkn->bon', p['w3'], h) + p['b3'][None, :, None]


# ---------------------------------------------------------------------------
if __name__ == "__main__":
    B, K, N, OUT_K = 4, 2, 256, 3

    key = jax.random.PRNGKey(0)
    kp, kx = jax.random.split(key)
    params = init_params(kp, k=K, out_k=OUT_K)
    x = jax.random.normal(kx, (B, K, N), dtype=jnp.float32)

    out = gsnet_forward(x, params)
    out = jax.block_until_ready(out)

    ref = reference_forward(x, params)
    assert out.shape == (B, OUT_K, N)
    np.testing.assert_allclose(np.asarray(out), np.asarray(ref), rtol=1e-2, atol=1e-2)
    print("KERNEL_OK")
</pallas_src>

<mosaic_0001>
module attributes {stable_mosaic.version = 11 : i64} {
  func.func @gsnet_kernel(%arg0: i32, %arg1: memref<2x1024xf32, #tpu.memory_space<vmem>>, %arg2: memref<64x2xf32, #tpu.memory_space<vmem>>, %arg3: memref<64x1xf32, #tpu.memory_space<vmem>>, %arg4: memref<8x64xf32, #tpu.memory_space<vmem>>, %arg5: memref<8x1xf32, #tpu.memory_space<vmem>>, %arg6: memref<8x1024xf32, #tpu.memory_space<vmem>>) attributes {dimension_semantics = [#tpu.dimension_semantics<arbitrary>], iteration_bounds = array<i64: 1>, scalar_prefetch = 0 : i64, scratch_operands = 0 : i64, tpu.core_type = #tpu.core_type<tc>, window_params = [{pipeline_mode = #tpu.pipeline_mode<synchronous>, transform_indices = @transform_0, window_bounds = array<i64: 2, 1024>}, {pipeline_mode = #tpu.pipeline_mode<synchronous>, transform_indices = @transform_1, window_bounds = array<i64: 64, 2>}, {pipeline_mode = #tpu.pipeline_mode<synchronous>, transform_indices = @transform_2, window_bounds = array<i64: 64, 1>}, {pipeline_mode = #tpu.pipeline_mode<synchronous>, transform_indices = @transform_3, window_bounds = array<i64: 8, 64>}, {pipeline_mode = #tpu.pipeline_mode<synchronous>, transform_indices = @transform_4, window_bounds = array<i64: 8, 1>}, {pipeline_mode = #tpu.pipeline_mode<synchronous>, transform_indices = @transform_5, window_bounds = array<i64: 8, 1024>}]} {
    %c0 = arith.constant 0 : index
    %c0_0 = arith.constant 0 : index
    %0 = vector.load %arg1[%c0, %c0_0] : memref<2x1024xf32, #tpu.memory_space<vmem>>, vector<2x1024xf32>
    %c0_1 = arith.constant 0 : index
    %c0_2 = arith.constant 0 : index
    %1 = vector.load %arg2[%c0_1, %c0_2] : memref<64x2xf32, #tpu.memory_space<vmem>>, vector<64x2xf32>
    %c0_3 = arith.constant 0 : index
    %c0_4 = arith.constant 0 : index
    %2 = vector.load %arg3[%c0_3, %c0_4] : memref<64x1xf32, #tpu.memory_space<vmem>>, vector<64x1xf32>
    %3 = vector.extract_strided_slice %1 {offsets = [0, 0], sizes = [64, 1], strides = [1, 1]} : vector<64x2xf32> to vector<64x1xf32>
    %4 = vector.extract_strided_slice %0 {offsets = [0, 0], sizes = [1, 1024], strides = [1, 1]} : vector<2x1024xf32> to vector<1x1024xf32>
    %5 = vector.broadcast %3 : vector<64x1xf32> to vector<64x1024xf32>
    %6 = vector.broadcast %4 : vector<1x1024xf32> to vector<64x1024xf32>
    %7 = arith.mulf %5, %6 : vector<64x1024xf32>
    %8 = vector.broadcast %2 : vector<64x1xf32> to vector<64x1024xf32>
    %9 = arith.addf %8, %7 : vector<64x1024xf32>
    %10 = vector.extract_strided_slice %1 {offsets = [0, 1], sizes = [64, 1], strides = [1, 1]} : vector<64x2xf32> to vector<64x1xf32>
    %11 = vector.extract_strided_slice %0 {offsets = [1, 0], sizes = [1, 1024], strides = [1, 1]} : vector<2x1024xf32> to vector<1x1024xf32>
    %12 = vector.broadcast %10 : vector<64x1xf32> to vector<64x1024xf32>
    %13 = vector.broadcast %11 : vector<1x1024xf32> to vector<64x1024xf32>
    %14 = arith.mulf %12, %13 : vector<64x1024xf32>
    %15 = arith.addf %9, %14 : vector<64x1024xf32>
    %cst = arith.constant 0.000000e+00 : f32
    %16 = vector.broadcast %cst : f32 to vector<64x1024xf32>
    %17 = arith.maximumf %15, %16 : vector<64x1024xf32>
    %c0_5 = arith.constant 0 : index
    %c0_6 = arith.constant 0 : index
    %18 = vector.load %arg4[%c0_5, %c0_6] : memref<8x64xf32, #tpu.memory_space<vmem>>, vector<8x64xf32>
    %19 = arith.truncf %18 : vector<8x64xf32> to vector<8x64xbf16>
    %20 = arith.truncf %17 : vector<64x1024xf32> to vector<64x1024xbf16>
    %cst_7 = arith.constant dense<0.000000e+00> : vector<8x1024xf32>
    %21 = tpu.matmul %19, %20, %cst_7 {dimension_numbers = #tpu.dot_dimension_numbers<[1], [0], [0], [1], [0, 0, 1, 1], [], []>} : vector<8x64xbf16>, vector<64x1024xbf16>, vector<8x1024xf32> -> vector<8x1024xf32>
    %c0_8 = arith.constant 0 : index
    %c0_9 = arith.constant 0 : index
    %22 = vector.load %arg5[%c0_8, %c0_9] : memref<8x1xf32, #tpu.memory_space<vmem>>, vector<8x1xf32>
    %23 = vector.broadcast %22 : vector<8x1xf32> to vector<8x1024xf32>
    %24 = arith.addf %21, %23 : vector<8x1024xf32>
    %c0_10 = arith.constant 0 : index
    %c0_11 = arith.constant 0 : index
    %25 = vector.load %arg6[%c0_10, %c0_11] : memref<8x1024xf32, #tpu.memory_space<vmem>>, vector<8x1024xf32>
    tpu.vector_store %arg6[%c0_10, %c0_11], %24 {strides = array<i32>} : memref<8x1024xf32, #tpu.memory_space<vmem>>, vector<8x1024xf32>,
    return
  }
  func.func @transform_0(%arg0: i32) -> (i32, i32) {
    %c0_i32 = arith.constant 0 : i32
    %c0_i32_0 = arith.constant 0 : i32
    %c0_i32_1 = arith.constant 0 : i32
    return %c0_i32, %c0_i32_0 : i32, i32
  }
  func.func @transform_1(%arg0: i32) -> (i32, i32) {
    %c0_i32 = arith.constant 0 : i32
    %c0_i32_0 = arith.constant 0 : i32
    %c0_i32_1 = arith.constant 0 : i32
    return %c0_i32, %c0_i32_0 : i32, i32
  }
  func.func @transform_2(%arg0: i32) -> (i32, i32) {
    %c0_i32 = arith.constant 0 : i32
    %c0_i32_0 = arith.constant 0 : i32
    %c0_i32_1 = arith.constant 0 : i32
    return %c0_i32, %c0_i32_0 : i32, i32
  }
  func.func @transform_3(%arg0: i32) -> (i32, i32) {
    %c0_i32 = arith.constant 0 : i32
    %c0_i32_0 = arith.constant 0 : i32
    %c0_i32_1 = arith.constant 0 : i32
    return %c0_i32, %c0_i32_0 : i32, i32
  }
  func.func @transform_4(%arg0: i32) -> (i32, i32) {
    %c0_i32 = arith.constant 0 : i32
    %c0_i32_0 = arith.constant 0 : i32
    %c0_i32_1 = arith.constant 0 : i32
    return %c0_i32, %c0_i32_0 : i32, i32
  }
  func.func @transform_5(%arg0: i32) -> (i32, i32) {
    %c0_i32 = arith.constant 0 : i32
    %c0_i32_0 = arith.constant 0 : i32
    %c0_i32_1 = arith.constant 0 : i32
    return %c0_i32, %c0_i32_0 : i32, i32
  }
}

</mosaic_0001>

<bundles_post_ra>
// kernel: tpu_custom_call.1
= control target key start
LH: loop header
LB: loop body
LE: loop exit
PB: predicated region body
PF: predicated region fallthrough
CT: control target
= control target key end

     0   :  { %v745_v2 = vmov 0   ;;  %s1287_s0 = inlined_call_operand.vmem [shape: f32[2,1024], index: 0, kind: input, shape index: {}]   ;;  %s1288_s1 = inlined_call_operand.vmem [shape: f32[64,2], index: 1, kind: input, shape index: {}]   ;;  %s1289_s2 = inlined_call_operand.vmem [shape: f32[64,1], index: 2, kind: input, shape index: {}]   ;;  %s1290_s3 = inlined_call_operand.vmem [shape: f32[8,64], index: 3, kind: input, shape index: {}]   ;;  %s1291_s4 = inlined_call_operand.vmem [shape: f32[8,1], index: 4, kind: input, shape index: {}]   ;;  %s1292_s5 = inlined_call_operand.hbm [shape: f32[8,1024], index: 5, kind: output, shape index: {}]  }
   0x1   :  { %v38_v0 = vld [vmem:[%s1289_s2 + $0x30] sm:$0xff]  ;;  %706 = vset.pattern.permute.xlu1 %v745_v2  ;;  %705 = vset.pattern.permute.xlu0 %v745_v2 }
   0x2   :  { %v30_v1 = vld [vmem:[%s1288_s1 + $0x30] sm:$0xff]  ;;  %202 = vperm.xlu1 %706, %v38_v0  }
   0x3   :  { %72 = vperm.xlu0 %705, %v30_v1  }
   0x4   :  { %10 = vsyncpa [#allocation3], 0  ;;  %v746_v3 = vmov 1   ;;  %v39_v4 = vld [vmem:[%s1289_s2 + $0x38] sm:$0xff]  ;;  %v29_v6 = vld [vmem:[%s1288_s1 + $0x28] sm:$0xff]  ;;  %vm562_vm0 = vcmask 523264  }
   0x5   :  { %707 = vset.pattern.permute.xlu2 %v746_v3  ;;  %v31_v5 = vld [vmem:[%s1288_s1 + $0x38] sm:$0xff]  ;;  %v28_v7 = vld [vmem:[%s1288_s1 + $0x20] sm:$0xff]  ;;  %v37_v9 = vld [vmem:[%s1289_s2 + $0x28] sm:$0xff]  ;;  %s685_s7 = sshll.u32 %s1292_s5, 4  ;;  %s686_s7 = int_to_ptr.hbm [resolvable:$true] %s685_s7 }
   0x6   :  { %299 = vperm.xlu2 %707, %v30_v1   ;;  %v36_v8 = vld [vmem:[%s1289_s2 + $0x20] sm:$0xff]  ;;  %v26_v10 = vld [vmem:[%s1288_s1 + $0x10] sm:$0xff]  ;;  %v27_v11 = vld [vmem:[%s1288_s1 + $0x18] sm:$0xff] }
   0x7   :  { %v34_v12 = vld [vmem:[%s1289_s2 + $0x10] sm:$0xff]  ;;  %v35_v13 = vld [vmem:[%s1289_s2 + $0x18] sm:$0xff]  ;;  %v24_v14 = vld [vmem:[%s1288_s1] sm:$0xff] }
   0x8   :  { %v25_v15 = vld [vmem:[%s1288_s1 + $0x8] sm:$0xff]  ;;  %v32_v16 = vld [vmem:[%s1289_s2] sm:$0xff] }
   0x9   :  { %v33_v17 = vld [vmem:[%s1289_s2 + $0x8] sm:$0xff]  ;;  %v556_v18 = vld [vmem:[%s1291_s4] sm:$0xff] }
   0xa   :  { %207 = vperm.xlu1 %706, %v39_v4   ;;  %v22_v20 = vld [vmem:[%s1287_s0] sm:$0xff]  ;;  %v23_v22 = vld [vmem:[%s1287_s0 + $0x8] sm:$0xff] }
   0xb   :  { %77 = vperm.xlu0 %705, %v31_v5   ;;  %v306_v23 = vperm.slane %v22_v20, 1  ;;  %v307_v24 = vperm.slane %v22_v20, 3  ;;  %v308_v25 = vperm.slane %v22_v20, 5  ;;  %v309_v26 = vperm.slane %v22_v20, 7 }
   0xc   :  { %v310_v27 = vperm.slane %v23_v22, 1  ;;  %v311_v28 = vperm.slane %v23_v22, 3  ;;  %v312_v29 = vperm.slane %v23_v22, 5  ;;  %v82_v30 = vperm.slane %v22_v20, 0 }
   0xd   :  { %v83_v31 = vperm.slane %v22_v20, 2  ;;  %v84_v32 = vperm.slane %v22_v20, 4  ;;  %v313_v33 = vperm.slane %v23_v22, 7  ;;  %v85_v34 = vperm.slane %v22_v20, 6 }
   0xe   :  { %303 = vperm.xlu2 %707, %v31_v5   ;;  %v86_v35 = vperm.slane %v23_v22, 0  ;;  %v87_v36 = vperm.slane %v23_v22, 2  ;;  %v88_v37 = vperm.slane %v23_v22, 4  ;;  %v837_v38 = vperm.slane %v306_v23, 1 }
   0xf   :  { %v839_v39 = vperm.slane %v307_v24, 1  ;;  %v841_v40 = vperm.slane %v308_v25, 1  ;;  %v89_v41 = vperm.slane %v23_v22, 6  ;;  %v843_v42 = vperm.slane %v309_v26, 1 }
  0x10   :  { %v845_v43 = vperm.slane %v310_v27, 1  ;;  %v847_v44 = vperm.slane %v311_v28, 1  ;;  %v849_v45 = vperm.slane %v312_v29, 1  ;;  %v853_v47 = vperm.slane %v82_v30, 0 }
  0x11   :  { %v855_v48 = vperm.slane %v83_v31, 0  ;;  %v857_v49 = vperm.slane %v84_v32, 0  ;;  %v859_v50 = vperm.slane %v313_v33, 1  ;;  %v861_v51 = vperm.slane %v85_v34, 0 }
  0x12   :  { %67 = vperm.xlu1 %706, %v29_v6   ;;  %1301 = vst [vmem:[#allocation5_spill] sm:$0xff] %v849_v45  ;;  %v863_v52 = vperm.slane %v86_v35, 0  ;;  %v865_v53 = vperm.slane %v87_v36, 0  ;;  %v867_v54 = vperm.slane %v88_v37, 0  ;;  %v872_v58 = vperm.slane %v89_v41, 0 }
  0x13   :  { %62 = vperm.xlu0 %705, %v28_v7  }
  0x14   :  { %1302 = vst [vmem:[#allocation6_spill] sm:$0xff] %v863_v52 }
  0x15   :  { %1303 = vst [vmem:[#allocation7_spill] sm:$0xff] %v867_v54 }
  0x16   :  { %708 = vset.pattern.permute.xlu2 %v745_v2 }
  0x17   :  { %192 = vperm.xlu2 %708, %v36_v8  }
  0x1a   :  { %709 = vset.pattern.permute.xlu1 %v746_v3 }
  0x1b   :  { %197 = vperm.xlu0 %705, %v37_v9   ;;  %291 = vperm.xlu1 %709, %v28_v7  }
  0x1f   :  { %710 = vset.pattern.permute.xlu2 %v746_v3 }
  0x20   :  { %295 = vperm.xlu2 %710, %v29_v6  }
  0x23   :  { %52 = vperm.xlu0 %705, %v26_v10   ;;  %711 = vset.pattern.permute.xlu1 %v745_v2 }
  0x24   :  { %57 = vperm.xlu1 %711, %v27_v11  }
  0x28   :  { %712 = vset.pattern.permute.xlu2 %v745_v2 }
  0x29   :  { %182 = vperm.xlu2 %712, %v34_v12  }
  0x2b   :  { %187 = vperm.xlu0 %705, %v35_v13  }
  0x2c   :  { %713 = vset.pattern.permute.xlu1 %v746_v3 }
  0x2d   :  { %283 = vperm.xlu1 %713, %v26_v10  }
  0x31   :  { %714 = vset.pattern.permute.xlu2 %v746_v3 }
  0x32   :  { %287 = vperm.xlu2 %714, %v27_v11  }
  0x33   :  { %42 = vperm.xlu0 %705, %v24_v14  }
  0x35   :  { %715 = vset.pattern.permute.xlu1 %v745_v2 }
  0x36   :  { %47 = vperm.xlu1 %715, %v25_v15  }
  0x3a   :  { %716 = vset.pattern.permute.xlu2 %v745_v2 }
  0x3b   :  { %172 = vperm.xlu2 %716, %v32_v16   ;;  %177 = vperm.xlu0 %705, %v33_v17  }
  0x3e   :  { %717 = vset.pattern.permute.xlu1 %v746_v3 }
  0x3f   :  { %275 = vperm.xlu1 %717, %v24_v14  }
  0x43   :  { %718 = vset.pattern.permute.xlu2 %v746_v3  ;;  %559 = vperm.xlu0 %705, %v556_v18  }
  0x44   :  { %279 = vperm.xlu2 %718, %v25_v15  }
  0x60   :  { %v300_v19 = vpop.permute.xlu2 %299 }
  0x61   :  { %v378_v55 = vmul.f32 %v837_v38, %v300_v19  ;;  %v379_v56 = vmul.f32 %v839_v39, %v300_v19  ;;  %v380_v57 = vmul.f32 %v841_v40, %v300_v19  ;;  %v381_v59 = vmul.f32 %v843_v42, %v300_v19 }
  0x62   :  { %v382_v60 = vmul.f32 %v845_v43, %v300_v19  ;;  %v383_v61 = vmul.f32 %v847_v44, %v300_v19  ;;  %v384_v62 = vmul.f32 %v849_v45, %v300_v19  ;;  %v385_v2 = vmul.f32 %v859_v50, %v300_v19 }
  0x68   :  { %v832_v21 = vpop.permute.xlu2 %303 }
  0x69   :  { %v386_v63 = vmul.f32 %v837_v38, %v832_v21  ;;  %v387_v0 = vmul.f32 %v839_v39, %v832_v21  ;;  %v388_v1 = vmul.f32 %v841_v40, %v832_v21  ;;  %v389_v5 = vmul.f32 %v843_v42, %v832_v21 }
  0x6a   :  { %v390_v6 = vmul.f32 %v845_v43, %v832_v21  ;;  %v391_v7 = vmul.f32 %v847_v44, %v832_v21  ;;  %v893_v8 = vmul.f32 %v849_v45, %v832_v21  ;;  %v907_v26 = vmul.f32 %v859_v50, %v832_v21 }
  0x71   :  { %v851_v46 = vpop.permute.xlu2 %192 }
  0x74   :  { %v203_v3 = vpop.permute.xlu1 %202 }
  0x75   :  { %v73_v4 = vpop.permute.xlu0 %72 }
  0x76   :  { %v154_v9 = vmul.f32 %v853_v47, %v73_v4  ;;  %v155_v10 = vmul.f32 %v855_v48, %v73_v4  ;;  %v156_v11 = vmul.f32 %v857_v49, %v73_v4  ;;  %v157_v12 = vmul.f32 %v861_v51, %v73_v4 }
  0x77   :  { %v158_v13 = vmul.f32 %v863_v52, %v73_v4  ;;  %v159_v14 = vmul.f32 %v865_v53, %v73_v4  ;;  %v160_v15 = vmul.f32 %v867_v54, %v73_v4  ;;  %v161_v16 = vmul.f32 %v872_v58, %v73_v4 }
  0x78   :  { %v258_v17 = vadd.f32 %v203_v3, %v154_v9  ;;  %v259_v18 = vadd.f32 %v203_v3, %v155_v10  ;;  %v260_v19 = vadd.f32 %v203_v3, %v156_v11  ;;  %v261_v20 = vadd.f32 %v203_v3, %v157_v12 }
  0x79   :  { %v262_v23 = vadd.f32 %v203_v3, %v158_v13  ;;  %v263_v24 = vadd.f32 %v203_v3, %v159_v14  ;;  %v264_v25 = vadd.f32 %v203_v3, %v160_v15  ;;  %v265_v34 = vadd.f32 %v203_v3, %v161_v16 }
  0x7a   :  { %v903_v22 = vpop.permute.xlu2 %295  ;;  %v442_v27 = vadd.f32 %v378_v55, %v258_v17  ;;  %v443_v28 = vadd.f32 %v379_v56, %v259_v18  ;;  %v444_v29 = vadd.f32 %v380_v57, %v260_v19  ;;  %v445_v30 = vadd.f32 %v381_v59, %v261_v20 }
  0x7b   :  { %v911_v31 = vmul.f32 %v837_v38, %v903_v22  ;;  %v915_v32 = vmul.f32 %v839_v39, %v903_v22  ;;  %v919_v33 = vmul.f32 %v841_v40, %v903_v22  ;;  %v923_v37 = vmul.f32 %v843_v42, %v903_v22 }
  0x7c   :  { %v506_v35 = vmax.f32 %v442_v27, 0.0  ;;  %v507_v21 = vmax.f32 %v443_v28, 0.0  ;;  %v508_v36 = vmax.f32 %v444_v29, 0.0  ;;  %v208_v41 = vpop.permute.xlu1 %207  ;;  %v509_v56 = vmax.f32 %v445_v30, 0.0 }
  0x7d   :  { %v78_v55 = vpop.permute.xlu0 %77  ;;  %v446_v57 = vadd.f32 %v382_v60, %v262_v23  ;;  %v925_v59 = vadd.f32 %v383_v61, %v263_v24  ;;  %v927_v4 = vadd.f32 %v384_v62, %v264_v25  ;;  %v935_v15 = vadd.f32 %v385_v2, %v265_v34 }
  0x7e   :  { %v162_v9 = vmul.f32 %v853_v47, %v78_v55  ;;  %v163_v10 = vmul.f32 %v855_v48, %v78_v55  ;;  %v164_v3 = vmul.f32 %v857_v49, %v78_v55  ;;  %v165_v11 = vmul.f32 %v861_v51, %v78_v55 }
  0x7f   :  { %v166_v12 = vmul.f32 %v863_v52, %v78_v55  ;;  %v510_v13 = vmax.f32 %v446_v57, 0.0  ;;  %v167_v14 = vmul.f32 %v865_v53, %v78_v55  ;;  %v511_v19 = vmax.f32 %v925_v59, 0.0 }
  0x80   :  { %v266_v60 = vadd.f32 %v208_v41, %v162_v9  ;;  %v267_v61 = vadd.f32 %v208_v41, %v163_v10  ;;  %v268_v16 = vadd.f32 %v208_v41, %v164_v3  ;;  %v269_v62 = vadd.f32 %v208_v41, %v165_v11 }
  0x81   :  { %v270_v17 = vadd.f32 %v208_v41, %v166_v12  ;;  %v271_v18 = vadd.f32 %v208_v41, %v167_v14  ;;  %v168_v20 = vmul.f32 %v867_v54, %v78_v55  ;;  %v169_v34 = vmul.f32 %v872_v58, %v78_v55 }
  0x82   :  { %v450_v23 = vadd.f32 %v386_v63, %v266_v60  ;;  %v451_v24 = vadd.f32 %v387_v0, %v267_v61  ;;  %v452_v25 = vadd.f32 %v388_v1, %v268_v16  ;;  %v453_v27 = vadd.f32 %v389_v5, %v269_v62 }
  0x83   :  { %v939_v28 = vpop.permute.xlu2 %182  ;;  %v454_v29 = vadd.f32 %v390_v6, %v270_v17  ;;  %v455_v30 = vadd.f32 %v391_v7, %v271_v18  ;;  %v272_v2 = vadd.f32 %v208_v41, %v168_v20  ;;  %v273_v1 = vadd.f32 %v208_v41, %v169_v34 }
  0x84   :  { %v514_v57 = vmax.f32 %v450_v23, 0.0  ;;  %v515_v9 = vmax.f32 %v451_v24, 0.0  ;;  %v516_v10 = vmax.f32 %v452_v25, 0.0  ;;  %v517_v3 = vmax.f32 %v453_v27, 0.0  ;;  %v942_v11 = vpop.permute.xlu1 %67 }
  0x85   :  { %v944_v59 = vpop.permute.xlu0 %62  ;;  %v518_v12 = vmax.f32 %v454_v29, 0.0  ;;  %v519_v63 = vmax.f32 %v455_v30, 0.0  ;;  %v456_v0 = vadd.f32 %v893_v8, %v272_v2  ;;  %v146_v60 = vmul.f32 %v853_v47, %v942_v11 }
  0x86   :  { %v548_v5 = vpack.c.bf16 %v514_v57, %v506_v35  ;;  %v549_v14 = vpack.c.bf16 %v515_v9, %v507_v21  ;;  %v550_v6 = vpack.c.bf16 %v516_v10, %v508_v36  ;;  %v551_v7 = vpack.c.bf16 %v517_v3, %v509_v56 }
  0x87   :  { %v138_v55 = vmul.f32 %v853_v47, %v944_v59  ;;  %v139_v61 = vmul.f32 %v855_v48, %v944_v59  ;;  %v147_v16 = vmul.f32 %v855_v48, %v942_v11  ;;  %v140_v8 = vmul.f32 %v857_v49, %v944_v59 }
  0x88   :  { %570 = vmatpush.bf16.msra.mxu0 %v548_v5  ;;  %583 = vmatpush.bf16.msra.mxu1 %v549_v14  ;;  %v148_v35 = vmul.f32 %v857_v49, %v942_v11  ;;  %v141_v21 = vmul.f32 %v861_v51, %v944_v59  ;;  %v520_v36 = vmax.f32 %v456_v0, 0.0  ;;  %v149_v62 = vmul.f32 %v861_v51, %v942_v11 }
  0x89   :  { %596 = vmatpush.bf16.msra.mxu2 %v550_v6  ;;  %609 = vmatpush.bf16.msra.mxu3 %v551_v7  ;;  %v242_v41 = vadd.f32 %v851_v46, %v138_v55  ;;  %v243_v56 = vadd.f32 %v851_v46, %v139_v61  ;;  %v512_v17 = vmax.f32 %v927_v4, 0.0  ;;  %v244_v18 = vadd.f32 %v851_v46, %v140_v8 }
  0x8a   :  { %v245_v20 = vadd.f32 %v851_v46, %v141_v21  ;;  %v968_v23 = vpack.c.bf16 %v518_v12, %v510_v13  ;;  %v513_v24 = vmax.f32 %v935_v15, 0.0  ;;  %v973_v27 = vpack.c.bf16 %v519_v63, %v511_v19 }
  0x8b   :  { %v975_v29 = vpack.c.bf16 %v520_v36, %v512_v17  ;;  %v457_v30 = vadd.f32 %v907_v26, %v273_v1  ;;  %v142_v2 = vmul.f32 %v863_v52, %v944_v59  ;;  %v150_v19 = vmul.f32 %v863_v52, %v942_v11 }
  0x8c   :  { %1304 = vst [vmem:[#allocation8_spill] sm:$0xff] %v968_v23  ;;  %v971_v25 = vpop.permute.xlu2 %287  ;;  %v374_v10 = vmul.f32 %v845_v43, %v903_v22 }
  0x8d   :  { %1305 = vst [vmem:[#allocation9_spill] sm:$0xff] %v971_v25  ;;  %v982_v4 = vmul.f32 %v837_v38, %v971_v25  ;;  %v986_v13 = vmul.f32 %v839_v39, %v971_v25  ;;  %v990_v15 = vmul.f32 %v841_v40, %v971_v25  ;;  %v994_v34 = vpop.permute.xlu0 %197  ;;  %v998_v26 = vmul.f32 %v843_v42, %v971_v25  ;;  %v1003_v3 = vpop.permute.xlu1 %291 }
  0x8e   :  { %1306 = vst [vmem:[#allocation10_spill] sm:$0xff] %v973_v27  ;;  %v521_v57 = vmax.f32 %v457_v30, 0.0  ;;  %v246_v9 = vadd.f32 %v851_v46, %v142_v2  ;;  %v250_v12 = vadd.f32 %v994_v34, %v146_v60  ;;  %v251_v63 = vadd.f32 %v994_v34, %v147_v16 }
  0x8f   :  { %1307 = vst [vmem:[#allocation11_spill] sm:$0xff] %v975_v29  ;;  %v252_v0 = vadd.f32 %v994_v34, %v148_v35  ;;  %v253_v1 = vadd.f32 %v994_v34, %v149_v62  ;;  %v362_v5 = vmul.f32 %v837_v38, %v1003_v3  ;;  %v363_v14 = vmul.f32 %v839_v39, %v1003_v3 }
  0x90   :  { %v364_v6 = vmul.f32 %v841_v40, %v1003_v3  ;;  %v365_v7 = vmul.f32 %v843_v42, %v1003_v3  ;;  %v434_v55 = vadd.f32 %v911_v31, %v250_v12  ;;  %v435_v60 = vadd.f32 %v915_v32, %v251_v63 }
  0x91   :  { %v436_v61 = vadd.f32 %v919_v33, %v252_v0  ;;  %v437_v16 = vadd.f32 %v923_v37, %v253_v1  ;;  %v426_v8 = vadd.f32 %v362_v5, %v242_v41  ;;  %v427_v35 = vadd.f32 %v363_v14, %v243_v56 }
  0x92   :  { %v428_v21 = vadd.f32 %v364_v6, %v244_v18  ;;  %v429_v36 = vadd.f32 %v365_v7, %v245_v20  ;;  %v498_v62 = vmax.f32 %v434_v55, 0.0  ;;  %v499_v17 = vmax.f32 %v435_v60, 0.0 }
  0x93   :  { %v500_v30 = vmax.f32 %v436_v61, 0.0  ;;  %v501_v2 = vmax.f32 %v437_v16, 0.0  ;;  %v490_v29 = vmax.f32 %v426_v8, 0.0  ;;  %v491_v27 = vmax.f32 %v427_v35, 0.0 }
  0x94   :  { %v492_v23 = vmax.f32 %v428_v21, 0.0  ;;  %v493_v25 = vmax.f32 %v429_v36, 0.0  ;;  %v1023_v31 = vpack.c.bf16 %v521_v57, %v513_v24  ;;  %v254_v32 = vadd.f32 %v994_v34, %v150_v19 }
  0x95   :  { %v1021_v52 = vpop.permute.xlu2 %172  ;;  %v366_v33 = vmul.f32 %v845_v43, %v1003_v3  ;;  %v143_v37 = vmul.f32 %v865_v53, %v944_v59  ;;  %v1030_v41 = vpop.permute.xlu0 %52  ;;  %v540_v56 = vpack.c.bf16 %v498_v62, %v490_v29  ;;  %v541_v18 = vpack.c.bf16 %v499_v17, %v491_v27 }
  0x96   :  { %1308 = vst [vmem:[#allocation12_spill] sm:$0xff] %v1023_v31  ;;  %v542_v20 = vpack.c.bf16 %v500_v30, %v492_v23  ;;  %v543_v12 = vpack.c.bf16 %v501_v2, %v493_v25  ;;  %v122_v63 = vmul.f32 %v853_v47, %v1030_v41  ;;  %v123_v24 = vmul.f32 %v855_v48, %v1030_v41  ;;  %v1040_v0 = vpop.permute.xlu1 %57 }
  0x97   :  { %v124_v19 = vmul.f32 %v857_v49, %v1030_v41  ;;  %v151_v57 = vmul.f32 %v865_v53, %v942_v11  ;;  %571 = vmatpush.bf16.msra.mxu0 %v540_v56  ;;  %584 = vmatpush.bf16.msra.mxu1 %v541_v18  ;;  %v125_v23 = vmul.f32 %v861_v51, %v1030_v41 }
  0x98   :  { %v430_v25 = vadd.f32 %v366_v33, %v246_v9  ;;  %v438_v27 = vadd.f32 %v374_v10, %v254_v32  ;;  %597 = vmatpush.bf16.msra.mxu2 %v542_v20  ;;  %610 = vmatpush.bf16.msra.mxu3 %v543_v12  ;;  %v130_v29 = vmul.f32 %v853_v47, %v1040_v0 }
  0x99   :  { %v226_v1 = vadd.f32 %v939_v28, %v122_v63  ;;  %v247_v5 = vadd.f32 %v851_v46, %v143_v37  ;;  %v131_v14 = vmul.f32 %v855_v48, %v1040_v0  ;;  %v227_v6 = vadd.f32 %v939_v28, %v123_v24 }
  0x9a   :  { %v132_v7 = vmul.f32 %v857_v49, %v1040_v0  ;;  %v228_v9 = vadd.f32 %v939_v28, %v124_v19  ;;  %v133_v10 = vmul.f32 %v861_v51, %v1040_v0  ;;  %v494_v55 = vmax.f32 %v430_v25, 0.0 }
  0x9b   :  { %v502_v60 = vmax.f32 %v438_v27, 0.0  ;;  %v255_v61 = vadd.f32 %v994_v34, %v151_v57  ;;  %v229_v16 = vadd.f32 %v939_v28, %v125_v23  ;;  %v367_v8 = vmul.f32 %v847_v44, %v1003_v3 }
  0x9c   :  { %v375_v35 = vmul.f32 %v847_v44, %v903_v22  ;;  %v144_v21 = vmul.f32 %v867_v54, %v944_v59  ;;  %v152_v62 = vmul.f32 %v867_v54, %v942_v11  ;;  %v368_v17 = vmul.f32 %v849_v45, %v1003_v3 }
  0x9d   :  { %v1064_v36 = vpack.c.bf16 %v502_v60, %v494_v55  ;;  %v376_v30 = vmul.f32 %v849_v45, %v903_v22  ;;  %v1072_v2 = vpop.permute.xlu0 %187  ;;  %v431_v33 = vadd.f32 %v367_v8, %v247_v5  ;;  %v1079_v18 = vmul.f32 %v872_v58, %v944_v59 }
  0x9e   :  { %v1074_v32 = vpop.permute.xlu2 %279  ;;  %v439_v37 = vadd.f32 %v375_v35, %v255_v61  ;;  %v248_v56 = vadd.f32 %v851_v46, %v144_v21  ;;  %v234_v20 = vadd.f32 %v1072_v2, %v130_v29  ;;  %v235_v12 = vadd.f32 %v1072_v2, %v131_v14 }
  0x9f   :  { %1309 = vst [vmem:[#allocation13_spill] sm:$0xff] %v1064_v36  ;;  %v236_v63 = vadd.f32 %v1072_v2, %v132_v7  ;;  %v237_v24 = vadd.f32 %v1072_v2, %v133_v10  ;;  %v1087_v19 = vmul.f32 %v837_v38, %v1074_v32  ;;  %v1091_v57 = vmul.f32 %v839_v39, %v1074_v32  ;;  %v1098_v25 = vpop.permute.xlu1 %283 }
  0xa0   :  { %v1095_v59 = vmul.f32 %v841_v40, %v1074_v32  ;;  %v256_v23 = vadd.f32 %v994_v34, %v152_v62  ;;  %v418_v27 = vadd.f32 %v982_v4, %v234_v20  ;;  %v419_v29 = vadd.f32 %v986_v13, %v235_v12  ;;  %v522_v4 = vld [vmem:[%s1290_s3] sm:$0xff]  ;;  %s747_s3 = smov [#allocation2]  }
  0xa1   :  { %v420_v5 = vadd.f32 %v990_v15, %v236_v63  ;;  %v421_v14 = vadd.f32 %v998_v26, %v237_v24  ;;  %v346_v7 = vmul.f32 %v837_v38, %v1098_v25  ;;  %v347_v10 = vmul.f32 %v839_v39, %v1098_v25  ;;  %s683_s29 = sshll.u32 %s747_s3, 4  ;;  %s684_s29 = int_to_ptr.vmem [resolvable:$true] %s683_s29 }
  0xa2   :  { %v348_v55 = vmul.f32 %v841_v40, %v1098_v25  ;;  %v349_v60 = vmul.f32 %v843_v42, %v1098_v25  ;;  %v482_v13 = vmax.f32 %v418_v27, 0.0  ;;  %v483_v15 = vmax.f32 %v419_v29, 0.0 }
  0xa3   :  { %v484_v61 = vmax.f32 %v420_v5, 0.0  ;;  %v341_v26 = vmul.f32 %v843_v42, %v1074_v32  ;;  %v410_v8 = vadd.f32 %v346_v7, %v226_v1  ;;  %v411_v35 = vadd.f32 %v347_v10, %v227_v6 }
  0xa4   :  { %v412_v21 = vadd.f32 %v348_v55, %v228_v9  ;;  %v413_v62 = vadd.f32 %v349_v60, %v229_v16  ;;  %v485_v20 = vmax.f32 %v421_v14, 0.0  ;;  %v1117_v12 = vpack.c.bf16 %v522_v4, %v522_v4 }
  0xa5   :  { %v495_v63 = vmax.f32 %v431_v33, 0.0  ;;  %v503_v24 = vmax.f32 %v439_v37, 0.0  ;;  %v1119_v36 = vpop.permute.xlu0 %42  ;;  %v474_v31 = vmax.f32 %v410_v8, 0.0  ;;  %v475_v45 = vmax.f32 %v411_v35, 0.0 }
  0xa6   :  { %v476_v54 = vmax.f32 %v412_v21, 0.0  ;;  %v477_v27 = vmax.f32 %v413_v62, 0.0  ;;  %v106_v29 = vmul.f32 %v853_v47, %v1119_v36  ;;  %v107_v1 = vmul.f32 %v855_v48, %v1119_v36 }
  0xa7   :  { %v108_v6 = vmul.f32 %v857_v49, %v1119_v36  ;;  %v109_v9 = vmul.f32 %v861_v51, %v1119_v36  ;;  %v532_v16 = vpack.c.bf16 %v482_v13, %v474_v31  ;;  %v533_v33 = vpack.c.bf16 %v483_v15, %v475_v45 }
  0xa8   :  { %v534_v37 = vpack.c.bf16 %v484_v61, %v476_v54  ;;  %v535_v5 = vpack.c.bf16 %v485_v20, %v477_v27  ;;  %v210_v14 = vadd.f32 %v1021_v52, %v106_v29  ;;  %v211_v7 = vadd.f32 %v1021_v52, %v107_v1  ;;  %v1133_v60 = vpop.permute.xlu1 %47 }
  0xa9   :  { %v212_v10 = vadd.f32 %v1021_v52, %v108_v6  ;;  %v213_v55 = vadd.f32 %v1021_v52, %v109_v9  ;;  %572 = vmatpush.bf16.msra.mxu0 %v532_v16  ;;  %585 = vmatpush.bf16.msra.mxu1 %v533_v33  ;;  %v1135_v4 = vpack.c.bf16 %v503_v24, %v495_v63  ;;  %v1311_v33 = vld [vmem:[#allocation9_spill] sm:$0xff] }
  0xaa   :  { %v432_v8 = vadd.f32 %v368_v17, %v248_v56  ;;  %v440_v35 = vadd.f32 %v376_v30, %v256_v23  ;;  %598 = vmatpush.bf16.msra.mxu2 %v534_v37  ;;  %611 = vmatpush.bf16.msra.mxu3 %v535_v5  ;;  %v114_v45 = vmul.f32 %v853_v47, %v1133_v60  ;;  %v1310_v56 = vld [vmem:[#allocation6_spill] sm:$0xff] }
  0xab   :  { %v115_v54 = vmul.f32 %v855_v48, %v1133_v60  ;;  %v116_v31 = vmul.f32 %v857_v49, %v1133_v60  ;;  %v117_v13 = vmul.f32 %v861_v51, %v1133_v60  ;;  %v153_v17 = vmul.f32 %v872_v58, %v942_v11 }
  0xac   :  { %v496_v15 = vmax.f32 %v432_v8, 0.0  ;;  %v504_v61 = vmax.f32 %v440_v35, 0.0  ;;  %v249_v30 = vadd.f32 %v851_v46, %v1079_v18  ;;  %v369_v47 = vmul.f32 %v859_v50, %v1003_v3 }
  0xad   :  { %v377_v48 = vmul.f32 %v859_v50, %v903_v22  ;;  %v126_v49 = vmul.f32 %v1310_v56, %v1030_v41  ;;  %v1155_v23 = vpop.permute.xlu0 %177  ;;  %v257_v21 = vadd.f32 %v994_v34, %v153_v17  ;;  %v134_v11 = vmul.f32 %v1310_v56, %v1040_v0 }
  0xae   :  { %v1157_v51 = vpack.c.bf16 %v504_v61, %v496_v15  ;;  %v350_v46 = vmul.f32 %v845_v43, %v1098_v25  ;;  %v218_v3 = vadd.f32 %v1155_v23, %v114_v45  ;;  %v219_v18 = vadd.f32 %v1155_v23, %v115_v54 }
  0xaf   :  { %v220_v22 = vadd.f32 %v1155_v23, %v116_v31  ;;  %v221_v62 = vadd.f32 %v1155_v23, %v117_v13  ;;  %v433_v20 = vadd.f32 %v369_v47, %v249_v30  ;;  %v441_v63 = vadd.f32 %v377_v48, %v257_v21 }
  0xb0   :  { %v230_v24 = vadd.f32 %v939_v28, %v126_v49  ;;  %v238_v34 = vadd.f32 %v1072_v2, %v134_v11  ;;  %v402_v27 = vadd.f32 %v1087_v19, %v218_v3  ;;  %v403_v29 = vadd.f32 %v1091_v57, %v219_v18 }
  0xb1   :  { %v404_v1 = vadd.f32 %v1095_v59, %v220_v22  ;;  %v405_v6 = vadd.f32 %v341_v26, %v221_v62  ;;  %v497_v9 = vmax.f32 %v433_v20, 0.0  ;;  %v505_v16 = vmax.f32 %v441_v63, 0.0  ;;  %v1175_v8 = vpop.permute.xlu1 %275 }
  0xb2   :  { %v358_v37 = vmul.f32 %v845_v43, %v1311_v33  ;;  %v414_v5 = vadd.f32 %v350_v46, %v230_v24  ;;  %v466_v35 = vmax.f32 %v402_v27, 0.0  ;;  %v467_v45 = vmax.f32 %v403_v29, 0.0 }
  0xb3   :  { %v468_v54 = vmax.f32 %v404_v1, 0.0  ;;  %v469_v31 = vmax.f32 %v405_v6, 0.0  ;;  %v330_v19 = vmul.f32 %v837_v38, %v1175_v8  ;;  %v331_v57 = vmul.f32 %v839_v39, %v1175_v8  ;;  %v1313_v1 = vld [vmem:[#allocation5_spill] sm:$0xff] }
  0xb4   :  { %v332_v59 = vmul.f32 %v841_v40, %v1175_v8  ;;  %v333_v26 = vmul.f32 %v843_v42, %v1175_v8  ;;  %v1185_v13 = vpack.c.bf16 %v505_v16, %v497_v9  ;;  %v422_v15 = vadd.f32 %v358_v37, %v238_v34  ;;  %v1312_v34 = vld [vmem:[#allocation7_spill] sm:$0xff] }
  0xb5   :  { %v478_v61 = vmax.f32 %v414_v5, 0.0  ;;  %v127_v17 = vmul.f32 %v865_v53, %v1030_v41  ;;  %v394_v30 = vadd.f32 %v330_v19, %v210_v14  ;;  %v395_v47 = vadd.f32 %v331_v57, %v211_v7 }
  0xb6   :  { %v396_v48 = vadd.f32 %v332_v59, %v212_v10  ;;  %v397_v38 = vadd.f32 %v333_v26, %v213_v55  ;;  %v486_v49 = vmax.f32 %v422_v15, 0.0  ;;  %v135_v39 = vmul.f32 %v865_v53, %v1040_v0  ;;  %v1316_v59 = vld [vmem:[#allocation11_spill] sm:$0xff]  ;;  %v1317_v26 = vld [vmem:[#allocation12_spill] sm:$0xff] }
  0xb7   :  { %v231_v40 = vadd.f32 %v939_v28, %v127_v17  ;;  %v351_v42 = vmul.f32 %v847_v44, %v1098_v25  ;;  %v458_v21 = vmax.f32 %v394_v30, 0.0  ;;  %v459_v11 = vmax.f32 %v395_v47, 0.0 }
  0xb8   :  { %v460_v46 = vmax.f32 %v396_v48, 0.0  ;;  %v461_v3 = vmax.f32 %v397_v38, 0.0  ;;  %v1194_v18 = vpack.c.bf16 %v486_v49, %v478_v61  ;;  %v239_v14 = vadd.f32 %v1072_v2, %v135_v39  ;;  %v1318_v38 = vld [vmem:[#allocation13_spill] sm:$0xff] }
  0xb9   :  { %v359_v7 = vmul.f32 %v847_v44, %v1311_v33  ;;  %v415_v10 = vadd.f32 %v351_v42, %v231_v40  ;;  %v524_v55 = vpack.c.bf16 %v466_v35, %v458_v21  ;;  %v525_v22 = vpack.c.bf16 %v467_v45, %v459_v11 }
  0xba   :  { %v526_v62 = vpack.c.bf16 %v468_v54, %v460_v46  ;;  %v527_v20 = vpack.c.bf16 %v469_v31, %v461_v3  ;;  %v128_v27 = vmul.f32 %v1312_v34, %v1030_v41  ;;  %v136_v29 = vmul.f32 %v1312_v34, %v1040_v0  ;;  %v1314_v54 = vld [vmem:[#allocation8_spill] sm:$0xff]  ;;  %v1315_v31 = vld [vmem:[#allocation10_spill] sm:$0xff] }
  0xbb   :  { %v423_v63 = vadd.f32 %v359_v7, %v239_v14  ;;  %v479_v24 = vmax.f32 %v415_v10, 0.0  ;;  %573 = vmatpush.bf16.msra.mxu0 %v524_v55  ;;  %586 = vmatpush.bf16.msra.mxu1 %v525_v22  ;;  %v352_v6 = vmul.f32 %v1313_v1, %v1098_v25  ;;  %v360_v9 = vmul.f32 %v1313_v1, %v1311_v33 }
  0xbc   :  { %v129_v16 = vmul.f32 %v872_v58, %v1030_v41  ;;  %599 = vmatpush.bf16.msra.mxu2 %v526_v62  ;;  %612 = vmatpush.bf16.msra.mxu3 %v527_v20  ;;  %v232_v5 = vadd.f32 %v939_v28, %v128_v27  ;;  %v240_v35 = vadd.f32 %v1072_v2, %v136_v29 }
  0xbd   :  { %v487_v37 = vmax.f32 %v423_v63, 0.0  ;;  %v137_v45 = vmul.f32 %v872_v58, %v1040_v0  ;;  %v353_v57 = vmul.f32 %v859_v50, %v1098_v25  ;;  %v361_v41 = vmul.f32 %v859_v50, %v1311_v33 }
  0xbe   :  { %v233_v19 = vadd.f32 %v939_v28, %v129_v16  ;;  %v416_v61 = vadd.f32 %v352_v6, %v232_v5  ;;  %v424_v17 = vadd.f32 %v360_v9, %v240_v35  ;;  %694 = vmatmul.msk.bf16.vlgmr.msra.gmra.mxu0 %vm562_vm0, %v1117_v12  ;;  %695 = vmatmul.msk.bf16.vlgmr.msra.gmra.mxu1 %vm562_vm0, %v1117_v12 }
  0xbf   :  { %622 = vmatpush.bf16.msrb.mxu0 %v1314_v54  ;;  %635 = vmatpush.bf16.msrb.mxu1 %v1315_v31  ;;  %v537_v15 = vpack.c.bf16 %v487_v37, %v479_v24  ;;  %v241_v28 = vadd.f32 %v1072_v2, %v137_v45  ;;  %v110_v25 = vmul.f32 %v1310_v56, %v1119_v36 }
  0xc0   :  { %648 = vmatpush.bf16.msrb.mxu2 %v1316_v59  ;;  %661 = vmatpush.bf16.msrb.mxu3 %v1317_v26  ;;  %v417_v0 = vadd.f32 %v353_v57, %v233_v19  ;;  %v480_v33 = vmax.f32 %v416_v61, 0.0  ;;  %v488_v30 = vmax.f32 %v424_v17, 0.0  ;;  %v118_v47 = vmul.f32 %v1310_v56, %v1133_v60 }
  0xc1   :  { %696 = vmatmul.msk.bf16.vlgmr.msra.gmra.mxu2 %vm562_vm0, %v1117_v12  ;;  %697 = vmatmul.msk.bf16.vlgmr.msra.gmra.mxu3 %vm562_vm0, %v1117_v12  ;;  %v334_v48 = vmul.f32 %v845_v43, %v1175_v8  ;;  %v425_v2 = vadd.f32 %v361_v41, %v241_v28  ;;  %v214_v39 = vadd.f32 %v1021_v52, %v110_v25 }
  0xc2   :  { %v481_v49 = vmax.f32 %v417_v0, 0.0  ;;  %v342_v40 = vmul.f32 %v845_v43, %v1074_v32  ;;  %v538_v42 = vpack.c.bf16 %v488_v30, %v480_v33  ;;  %v222_v56 = vadd.f32 %v1155_v23, %v118_v47 }
  0xc3   :  { %623 = vmatpush.bf16.msrb.mxu0 %v1318_v38  ;;  %636 = vmatpush.bf16.msrb.mxu1 %v1135_v4  ;;  %v111_v21 = vmul.f32 %v865_v53, %v1119_v36  ;;  %v489_v11 = vmax.f32 %v425_v2, 0.0  ;;  %v398_v46 = vadd.f32 %v334_v48, %v214_v39  ;;  %v119_v4 = vmul.f32 %v865_v53, %v1133_v60 }
  0xc4   :  { %649 = vmatpush.bf16.msrb.mxu2 %v1157_v51  ;;  %662 = vmatpush.bf16.msrb.mxu3 %v1185_v13  ;;  %v335_v3 = vmul.f32 %v847_v44, %v1175_v8  ;;  %v406_v14 = vadd.f32 %v342_v40, %v222_v56  ;;  %v343_v51 = vmul.f32 %v847_v44, %v1074_v32 }
  0xc5   :  { %v215_v43 = vadd.f32 %v1021_v52, %v111_v21  ;;  %v112_v13 = vmul.f32 %v1312_v34, %v1119_v36  ;;  %v539_v7 = vpack.c.bf16 %v489_v11, %v481_v49  ;;  %v462_v10 = vmax.f32 %v398_v46, 0.0 }
  0xc6   :  { %v223_v55 = vadd.f32 %v1155_v23, %v119_v4  ;;  %v120_v53 = vmul.f32 %v1312_v34, %v1133_v60  ;;  %v470_v22 = vmax.f32 %v406_v14, 0.0  ;;  %v336_v44 = vmul.f32 %v1313_v1, %v1175_v8 }
  0xc7   :  { %624 = vmatpush.bf16.msrb.mxu0 %v1194_v18  ;;  %637 = vmatpush.bf16.msrb.mxu1 %v537_v15  ;;  %v399_v62 = vadd.f32 %v335_v3, %v215_v43  ;;  %v216_v20 = vadd.f32 %v1021_v52, %v112_v13  ;;  %v344_v24 = vmul.f32 %v1313_v1, %v1074_v32 }
  0xc8   :  { %650 = vmatpush.bf16.msrb.mxu2 %v538_v42  ;;  %663 = vmatpush.bf16.msrb.mxu3 %v539_v7  ;;  %v407_v63 = vadd.f32 %v343_v51, %v223_v55  ;;  %v224_v18 = vadd.f32 %v1155_v23, %v120_v53  ;;  %v113_v27 = vmul.f32 %v872_v58, %v1119_v36 }
  0xc9   :  { %v528_v29 = vpack.c.bf16 %v470_v22, %v462_v10  ;;  %v463_v34 = vmax.f32 %v399_v62, 0.0  ;;  %v400_v6 = vadd.f32 %v336_v44, %v216_v20  ;;  %v121_v9 = vmul.f32 %v872_v58, %v1133_v60 }
  0xca   :  { %v471_v16 = vmax.f32 %v407_v63, 0.0  ;;  %v408_v37 = vadd.f32 %v344_v24, %v224_v18  ;;  %v217_v5 = vadd.f32 %v1021_v52, %v113_v27  ;;  %v337_v35 = vmul.f32 %v859_v50, %v1175_v8 }
  0xcb   :  { %625 = vmatpush.bf16.msrb.mxu0 %v528_v29  ;;  %v464_v45 = vmax.f32 %v400_v6, 0.0  ;;  %v225_v1 = vadd.f32 %v1155_v23, %v121_v9  ;;  %v345_v36 = vmul.f32 %v859_v50, %v1074_v32  ;;  %v560_v50 = vpop.permute.xlu0 %559 }
  0xcc   :  { %v529_v54 = vpack.c.bf16 %v471_v16, %v463_v34  ;;  %v472_v31 = vmax.f32 %v408_v37, 0.0  ;;  %v401_v19 = vadd.f32 %v337_v35, %v217_v5 }
  0xcd   :  { %v409_v57 = vadd.f32 %v345_v36, %v225_v1 }
  0xce   :  { %638 = vmatpush.bf16.msrb.mxu1 %v529_v54  ;;  %v530_v58 = vpack.c.bf16 %v472_v31, %v464_v45  ;;  %v465_v60 = vmax.f32 %v401_v19, 0.0  ;;  %698 = vmatmul.msk.bf16.vlgmr.msrb.gmra.mxu0 %vm562_vm0, %v1117_v12 }
  0xcf   :  { %v473_v41 = vmax.f32 %v409_v57, 0.0 }
  0xd0   :  { %651 = vmatpush.bf16.msrb.mxu2 %v530_v58 }
  0xd1   :  { %v531_v52 = vpack.c.bf16 %v473_v41, %v465_v60  ;;  %699 = vmatmul.msk.bf16.vlgmr.msrb.gmra.mxu1 %vm562_vm0, %v1117_v12 }
  0xd3   :  { %664 = vmatpush.bf16.msrb.mxu3 %v531_v52  ;;  %700 = vmatmul.msk.bf16.vlgmr.msrb.gmra.mxu2 %vm562_vm0, %v1117_v12 }
  0xd6   :  { %701 = vmatmul.msk.bf16.vlgmr.msrb.gmra.mxu3 %vm562_vm0, %v1117_v12 }
 0x13b   :  { %v575_v32 = vpop.f32.mrf.mxu0  ;;  %v588_v23 = vpop.f32.mrf.mxu1 }
 0x13c   :  { %v576_v8 = vadd.f32 %v575_v32, %v560_v50  ;;  %v589_v59 = vadd.f32 %v588_v23, %v560_v50 }
 0x13e   :  { %670 = vst [vmem:[#allocation2] sm:$0xff] %v576_v8 }
 0x13f   :  { %671 = vst [vmem:[#allocation2 + $0x8] sm:$0xff] %v589_v59 }
 0x143   :  { %v577_v28 = vpop.f32.mrf.mxu0  ;;  %v590_v0 = vpop.f32.mrf.mxu1 }
 0x144   :  { %v601_v26 = vpop.f32.mrf.mxu2  ;;  %v614_v15 = vpop.f32.mrf.mxu3 }
 0x145   :  { %v602_v61 = vadd.f32 %v601_v26, %v560_v50  ;;  %v615_v17 = vadd.f32 %v614_v15, %v560_v50 }
 0x147   :  { %672 = vst [vmem:[#allocation2 + $0x10] sm:$0xff] %v602_v61 }
 0x148   :  { %673 = vst [vmem:[#allocation2 + $0x18] sm:$0xff] %v615_v17 }
 0x14b   :  { %v627_v30 = vpop.f32.mrf.mxu0 }
 0x14c   :  { %v603_v25 = vpop.f32.mrf.mxu2  ;;  %v616_v33 = vpop.f32.mrf.mxu3  ;;  %v628_v47 = vadd.f32 %v627_v30, %v560_v50 }
 0x14e   :  { %v640_v12 = vpop.f32.mrf.mxu1  ;;  %674 = vst [vmem:[#allocation2 + $0x20] sm:$0xff] %v628_v47 }
 0x14f   :  { %v641_v48 = vadd.f32 %v640_v12, %v560_v50 }
 0x151   :  { %675 = vst [vmem:[#allocation2 + $0x28] sm:$0xff] %v641_v48 }
 0x153   :  { %v629_v38 = vpop.f32.mrf.mxu0 }
 0x156   :  { %v653_v2 = vpop.f32.mrf.mxu2  ;;  %v642_v49 = vpop.f32.mrf.mxu1 }
 0x157   :  { %v654_v39 = vadd.f32 %v653_v2, %v560_v50 }
 0x159   :  { %676 = vst [vmem:[#allocation2 + $0x30] sm:$0xff] %v654_v39  ;;  %v666_v40 = vpop.f32.mrf.mxu3 }
 0x15a   :  { %v667_v42 = vadd.f32 %v666_v40, %v560_v50 }
 0x15c   :  { %677 = vst [vmem:[#allocation2 + $0x38] sm:$0xff] %v667_v42 }
 0x15d   :  { %688 = dma.vmem_to_hbm [thread:$0]  %s684_s29, 1024, %s686_s7, [#allocation3]  }
 0x15e   :  { %v655_v56 = vpop.f32.mrf.mxu2 }
 0x161   :  { %v668_v21 = vpop.f32.mrf.mxu3 }
 0x162   :  { %743 = dma.done.wait [#allocation3], 1024  }
 0x163   :  { %744 = vsyncadd [#allocation3], 4294966272 }
 0x164   :  { %693 = vsyncpa [#allocation3], 1 }

</bundles_post_ra>
